<compile_context>
chip_gen: v6e
topology: v6e:2x2x1
jax: 0.10.0
libtpu: 0.0.40
codegen_flags: <defaults>
</compile_context>

<pallas_src>
import numpy as np
import jax
import jax.numpy as jnp
from jax.experimental import pallas as pl
from jax.experimental.pallas import tpu as pltpu

# --- module hyperparameters (small, consistent with the PyTorch module) ------
FILTER_LENGTH = 64
HOP_LENGTH = 16
WIN_LENGTH = 64
CUTOFF = FILTER_LENGTH // 2 + 1          # 33
TWO_C = 2 * CUTOFF                       # 66
MAX_ROW_TILE = 1024                      # frames (rows) per grid step (upper bound)


# --- deterministic parameter / buffer construction (numpy, like __init__) ----
def _hann_periodic(n):
    k = np.arange(n)
    return 0.5 - 0.5 * np.cos(2.0 * np.pi * k / n)   # scipy get_window('hann', n, fftbins=True)


def _pad_center(w, size):
    n = len(w)
    lpad = (size - n) // 2
    return np.pad(w, (lpad, size - n - lpad))


def make_bases():
    scale = FILTER_LENGTH / HOP_LENGTH
    fourier_basis = np.fft.fft(np.eye(FILTER_LENGTH))
    fb = np.vstack([np.real(fourier_basis[:CUTOFF, :]),
                    np.imag(fourier_basis[:CUTOFF, :])])            # (2C, F)
    forward_basis = fb.astype(np.float32)
    inverse_basis = np.linalg.pinv(scale * fb).T.astype(np.float32)  # (2C, F)
    win = _pad_center(_hann_periodic(WIN_LENGTH), FILTER_LENGTH).astype(np.float32)
    forward_basis = forward_basis * win[None, :]
    inverse_basis = inverse_basis * win[None, :]
    return forward_basis, inverse_basis


def make_kernel_bases(forward_basis, inverse_basis):
    """Build the two matrices the fused kernel consumes.

    fwd_t:    (F, 2C)   forward_basis.T                     -> spec = frames @ fwd_t
    combined: (F, F)    forward_basis.T @ inverse_basis     -> contrib = frames @ combined
    (combined folds the forward + inverse matmuls into one K=F product, removing the
     zero reduction rows and the serial fwd->contrib dependency inside the kernel.)
    """
    fwd_t = forward_basis.T.astype(np.float32)                        # (64, 66)
    combined = (forward_basis.T @ inverse_basis).astype(np.float32)   # (64, 64)
    return jnp.asarray(fwd_t), jnp.asarray(combined)


def window_sumsquare(n_frames):
    # librosa.filters.window_sumsquare equivalent for hann / norm=None
    n = FILTER_LENGTH + HOP_LENGTH * (n_frames - 1)
    x = np.zeros(n, dtype=np.float32)
    win_sq = _hann_periodic(WIN_LENGTH) ** 2
    win_sq = _pad_center(win_sq, FILTER_LENGTH)
    for i in range(n_frames):
        s = i * HOP_LENGTH
        x[s:min(n, s + FILTER_LENGTH)] += win_sq[:max(0, min(FILTER_LENGTH, n - s))]
    return x


# --- fused Pallas kernel ------------------------------------------------------
def _stft_fused_kernel(frames_ref, fwd_t_ref, comb_ref, ri_ref, contrib_ref):
    f = frames_ref[...]
    # Forward STFT: (tile, F) @ (F, 2C) -> [real(33) | imag(33)]
    ri_ref[...] = jnp.dot(f, fwd_t_ref[...], preferred_element_type=jnp.float32)
    # Fused forward+inverse (recombine == [real, imag]):
    #   (tile, F) @ (F, F) where comb = forward_basis.T @ inverse_basis.
    contrib_ref[...] = jnp.dot(f, comb_ref[...], preferred_element_type=jnp.float32)


# --- pallas_call wrapper ------------------------------------------------------
def _round_up(x, m):
    return (x + m - 1) // m * m


def _choose_tiling(rows):
    """Pick (tile, steps, padded_rows): big tiles, minimal padding, grid >= 2 when possible."""
    rows8 = _round_up(max(rows, 8), 8)
    min_steps = 2 if rows8 >= 16 else 1          # keep both v7x TensorCores busy
    steps = max(pl.cdiv(rows8, MAX_ROW_TILE), min_steps)
    tile = _round_up(pl.cdiv(rows8, steps), 8)
    steps = pl.cdiv(rows8, tile)
    return tile, steps, tile * steps


def stft_fused(frames_2d, fwd_t, comb):
    rows = frames_2d.shape[0]
    tile, steps, rows_p = _choose_tiling(rows)
    frames_p = jnp.pad(frames_2d, ((0, rows_p - rows), (0, 0)))
    ri, contrib = pl.pallas_call(
        _stft_fused_kernel,
        out_shape=(jax.ShapeDtypeStruct((rows_p, TWO_C), jnp.float32),
                   jax.ShapeDtypeStruct((rows_p, FILTER_LENGTH), jnp.float32)),
        grid_spec=pltpu.PrefetchScalarGridSpec(
            num_scalar_prefetch=0,
            grid=(steps,),
            in_specs=[pl.BlockSpec((tile, FILTER_LENGTH), lambda i: (i, 0)),
                      pl.BlockSpec((FILTER_LENGTH, TWO_C), lambda i: (0, 0)),
                      pl.BlockSpec((FILTER_LENGTH, FILTER_LENGTH), lambda i: (0, 0))],
            out_specs=(pl.BlockSpec((tile, TWO_C), lambda i: (i, 0)),
                       pl.BlockSpec((tile, FILTER_LENGTH), lambda i: (i, 0))),
        ),
        compiler_params=pltpu.CompilerParams(dimension_semantics=("parallel",)),
    )(frames_p, fwd_t, comb)
    return ri[:rows], contrib[:rows]


# --- full STFT.forward() ------------------------------------------------------
def stft_module_forward(input_data, fwd_t, comb):
    """input_data: (B, S) float32 -> reconstruction (B, 1, S), plus (magnitude, phase)."""
    B, S = input_data.shape
    half = FILTER_LENGTH // 2

    # ---- framing (reflect pad + strided gather) ------------------------------
    padded = jnp.pad(input_data, ((0, 0), (half, half)), mode='reflect')
    T = (padded.shape[1] - FILTER_LENGTH) // HOP_LENGTH + 1
    # TODO(synk): frame materialization stays in XLA (one gather pass); in-kernel
    # contiguous-span DMA + sublane-shifted assembly would cut frame traffic ~8x.
    idx = jnp.arange(T)[:, None] * HOP_LENGTH + jnp.arange(FILTER_LENGTH)[None, :]
    frames_2d = padded[:, idx].reshape(B * T, FILTER_LENGTH)        # (B*T, F)

    # ---- fused forward + (forward @ inverse) matmuls on TPU -------------------
    ri, contrib = stft_fused(frames_2d, fwd_t, comb)

    real = ri[:, :CUTOFF].reshape(B, T, CUTOFF)
    imag = ri[:, CUTOFF:TWO_C].reshape(B, T, CUTOFF)
    # Returned outputs in PyTorch NCL layout; sqrt/atan2 kept as plain-JAX glue.
    magnitude = jnp.sqrt(real * real + imag * imag).transpose(0, 2, 1)   # (B, C, T)
    phase = jnp.arctan2(imag, real).transpose(0, 2, 1)                   # (B, C, T)

    # ---- overlap-add (conv_transpose1d with stride=hop) -----------------------
    contrib = contrib.reshape(B, T, FILTER_LENGTH)
    K = FILTER_LENGTH // HOP_LENGTH
    c4 = contrib.reshape(B, T, K, HOP_LENGTH)
    acc = sum(jnp.pad(c4[:, :, k, :], ((0, 0), (k, K - 1 - k), (0, 0)))
              for k in range(K))                                          # (B, T+K-1, HOP)
    inverse_transform = acc.reshape(B, 1, (T + K - 1) * HOP_LENGTH)

    # ---- window-sum-square normalization (librosa), only where > tiny --------
    wss = window_sumsquare(T)
    tiny = np.finfo(np.float32).tiny
    nz = wss > tiny
    denom = jnp.asarray(np.where(nz, wss, 1.0).astype(np.float32))
    nz_j = jnp.asarray(nz)
    inverse_transform = jnp.where(nz_j[None, None, :],
                                  inverse_transform / denom[None, None, :],
                                  inverse_transform)
    inverse_transform = inverse_transform * (float(FILTER_LENGTH) / HOP_LENGTH)

    # trim the reflect padding
    inverse_transform = inverse_transform[:, :, half:-half]              # (B, 1, S)
    return inverse_transform, magnitude, phase


if __name__ == "__main__":
    key = jax.random.PRNGKey(0)
    B, S = 2, 256
    input_data = jax.random.normal(key, (B, S), dtype=jnp.float32)

    forward_basis, inverse_basis = make_bases()
    fwd_t, comb = make_kernel_bases(forward_basis, inverse_basis)

    forward_fn = jax.jit(stft_module_forward)
    recon, magnitude, phase = forward_fn(input_data, fwd_t, comb)
    jax.block_until_ready(recon)
    jax.block_until_ready(magnitude)
    jax.block_until_ready(phase)

    assert recon.shape == (B, 1, S)
    assert magnitude.shape == (B, CUTOFF, S // HOP_LENGTH + 1)
    assert phase.shape == (B, CUTOFF, S // HOP_LENGTH + 1)
    print("KERNEL_OK")
</pallas_src>

<mosaic_0001>
module attributes {stable_mosaic.version = 11 : i64} {
  func.func @_stft_fused_kernel(%arg0: i32, %arg1: memref<24x64xf32, #tpu.memory_space<vmem>>, %arg2: memref<64x66xf32, #tpu.memory_space<vmem>>, %arg3: memref<64x64xf32, #tpu.memory_space<vmem>>, %arg4: memref<24x66xf32, #tpu.memory_space<vmem>>, %arg5: memref<24x64xf32, #tpu.memory_space<vmem>>) attributes {dimension_semantics = [#tpu.dimension_semantics<parallel>], iteration_bounds = array<i64: 2>, scalar_prefetch = 0 : i64, scratch_operands = 0 : i64, tpu.core_type = #tpu.core_type<tc>, window_params = [{transform_indices = @transform_0, window_bounds = array<i64: 24, 64>}, {pipeline_mode = #tpu.pipeline_mode<synchronous>, transform_indices = @transform_1, window_bounds = array<i64: 64, 66>}, {pipeline_mode = #tpu.pipeline_mode<synchronous>, transform_indices = @transform_2, window_bounds = array<i64: 64, 64>}, {transform_indices = @transform_3, window_bounds = array<i64: 24, 66>}, {transform_indices = @transform_4, window_bounds = array<i64: 24, 64>}]} {
    %c0 = arith.constant 0 : index
    %c0_0 = arith.constant 0 : index
    %0 = vector.load %arg1[%c0, %c0_0] : memref<24x64xf32, #tpu.memory_space<vmem>>, vector<24x64xf32>
    %c0_1 = arith.constant 0 : index
    %c0_2 = arith.constant 0 : index
    %1 = vector.load %arg2[%c0_1, %c0_2] : memref<64x66xf32, #tpu.memory_space<vmem>>, vector<64x66xf32>
    %cst = arith.constant dense<0.000000e+00> : vector<24x66xf32>
    %2 = tpu.matmul %0, %1, %cst {dimension_numbers = #tpu.dot_dimension_numbers<[1], [0], [0], [1], [0, 0, 1, 1], [], []>} : vector<24x64xf32>, vector<64x66xf32>, vector<24x66xf32> -> vector<24x66xf32>
    %c0_3 = arith.constant 0 : index
    %c0_4 = arith.constant 0 : index
    %3 = vector.load %arg4[%c0_3, %c0_4] : memref<24x66xf32, #tpu.memory_space<vmem>>, vector<24x66xf32>
    tpu.vector_store %arg4[%c0_3, %c0_4], %2 {strides = array<i32>} : memref<24x66xf32, #tpu.memory_space<vmem>>, vector<24x66xf32>,
    %c0_5 = arith.constant 0 : index
    %c0_6 = arith.constant 0 : index
    %4 = vector.load %arg3[%c0_5, %c0_6] : memref<64x64xf32, #tpu.memory_space<vmem>>, vector<64x64xf32>
    %cst_7 = arith.constant dense<0.000000e+00> : vector<24x64xf32>
    %5 = tpu.matmul %0, %4, %cst_7 {dimension_numbers = #tpu.dot_dimension_numbers<[1], [0], [0], [1], [0, 0, 1, 1], [], []>} : vector<24x64xf32>, vector<64x64xf32>, vector<24x64xf32> -> vector<24x64xf32>
    %c0_8 = arith.constant 0 : index
    %c0_9 = arith.constant 0 : index
    %6 = vector.load %arg5[%c0_8, %c0_9] : memref<24x64xf32, #tpu.memory_space<vmem>>, vector<24x64xf32>
    tpu.vector_store %arg5[%c0_8, %c0_9], %5 {strides = array<i32>} : memref<24x64xf32, #tpu.memory_space<vmem>>, vector<24x64xf32>,
    return
  }
  func.func @transform_0(%arg0: i32) -> (i32, i32) {
    %c0_i32 = arith.constant 0 : i32
    %c0_i32_0 = arith.constant 0 : i32
    return %arg0, %c0_i32 : i32, i32
  }
  func.func @transform_1(%arg0: i32) -> (i32, i32) {
    %c0_i32 = arith.constant 0 : i32
    %c0_i32_0 = arith.constant 0 : i32
    %c0_i32_1 = arith.constant 0 : i32
    return %c0_i32, %c0_i32_0 : i32, i32
  }
  func.func @transform_2(%arg0: i32) -> (i32, i32) {
    %c0_i32 = arith.constant 0 : i32
    %c0_i32_0 = arith.constant 0 : i32
    %c0_i32_1 = arith.constant 0 : i32
    return %c0_i32, %c0_i32_0 : i32, i32
  }
  func.func @transform_3(%arg0: i32) -> (i32, i32) {
    %c0_i32 = arith.constant 0 : i32
    %c0_i32_0 = arith.constant 0 : i32
    return %arg0, %c0_i32 : i32, i32
  }
  func.func @transform_4(%arg0: i32) -> (i32, i32) {
    %c0_i32 = arith.constant 0 : i32
    %c0_i32_0 = arith.constant 0 : i32
    return %arg0, %c0_i32 : i32, i32
  }
}

</mosaic_0001>

<bundles_post_ra>
// kernel: stft_module_forward.1
= control target key start
LH: loop header
LB: loop body
LE: loop exit
PB: predicated region body
PF: predicated region fallthrough
CT: control target
= control target key end

     0   :  { %s634_s15 = smov 0   ;;  %s741_s0 = inlined_call_operand.vmem [shape: f32[48,64], index: 0, kind: input, shape index: {}]   ;;  %s742_s1 = inlined_call_operand.vmem [shape: f32[64,66], index: 1, kind: input, shape index: {}]   ;;  %s743_s2 = inlined_call_operand.vmem [shape: f32[64,64], index: 2, kind: input, shape index: {}]   ;;  %s744_s3 = inlined_call_operand.vmem [shape: f32[48,66], index: 3, kind: output, shape index: {0}]   ;;  %s745_s4 = inlined_call_operand.vmem [shape: f32[48,64], index: 4, kind: output, shape index: {1}]  }
   0x1 LB: > { %s501_s16 = sadd.s32 4294967295, %s605_s15   ;;  %p505_p0 = scmp.ge.s32.totalorder %s605_s15, 1  ;;  %s605_s15 = sphi %s634_s15, %s15_s15  }
   0x2   : > { %p166_p1 = scmp.lt.s32.totalorder %s605_s15, 3 }
   0x4   : > { %p167_p2 = pnand %p505_p0, %p166_p1 }
   0x5   : > { %s197_s21 = smul.u32 (!%p167_p2), 3, %s501_s16 }
   0x6   : > { %170 = sbr.rel (%p167_p2) target bundleno = 232 (0xe8), region = 32 }
   0x7   : > { %p198_p3 = scmp.lt.s32.totalorder (!%p167_p2), %s197_s21, 5 }
   0xb   : > { %v225_v0 = vld [vmem:[%s742_s1 + $0x38] sm:$0xff]  ;;  %v607_v2 = vmov 0.0   ;;  %v224_v3 = vld [vmem:[%s742_s1 + $0x30] sm:$0xff]  ;;  %v223_v5 = vld [vmem:[%s742_s1 + $0x28] sm:$0xff]  ;;  %s747_s21 = smov (!%p198_p3, %s197_s21), 5  ;;  %vm226_vm0 = vcmask 523264  }
   0xc   : > { %v327_v1 = vld [vmem:[%s743_s2 + $0x38] sm:$0xff]  ;;  %539 = vmatprep.subr.mxu0 %v607_v2  ;;  %564 = vmatprep.subr.mxu1 %v607_v2  ;;  %v326_v4 = vld [vmem:[%s743_s2 + $0x30] sm:$0xff]  ;;  %v325_v6 = vld [vmem:[%s743_s2 + $0x28] sm:$0xff]  ;;  %s688_s17 = sshll.u32 %s747_s21, 3  ;;  %vm608_vm1 = vmmov 0   ;;  %vm316_vm2 = vcmask 539648  }
   0xd   : > { %540 = vmatpush3.msra.mxu0 %v225_v0  ;;  %565 = vmatpush3.msra.mxu1 %v327_v1  ;;  %v222_v7 = vld [vmem:[%s742_s1 + $0x20] sm:$0xff]  ;;  %v221_v9 = vld [vmem:[%s742_s1 + $0x18] sm:$0xff]  ;;  %v220_v11 = vld [vmem:[%s742_s1 + $0x10] sm:$0xff]  ;;  %s201_s24 = scalar_lea.vmem %s741_s0, %s688_s17  ;;  %s207_s5 = scalar_lea.vmem %s744_s3, %s688_s17 }
   0xe   : > { %541 = vmatprep.subr.mxu0 %v607_v2  ;;  %566 = vmatprep.subr.mxu1 %v607_v2  ;;  %v324_v8 = vld [vmem:[%s743_s2 + $0x20] sm:$0xff]  ;;  %v323_v10 = vld [vmem:[%s743_s2 + $0x18] sm:$0xff]  ;;  %v322_v12 = vld [vmem:[%s743_s2 + $0x10] sm:$0xff]  ;;  %s213_s8 = scalar_lea.vmem %s745_s4, %s688_s17 }
   0xf   : > { %542 = vmatpush3.msra.mxu0 %v224_v3  ;;  %567 = vmatpush3.msra.mxu1 %v326_v4  ;;  %v219_v13 = vld [vmem:[%s742_s1 + $0x8] sm:$0xff]  ;;  %v218_v15 = vld [vmem:[%s742_s1] sm:$0xff]  ;;  %v217_v19 = vld [vmem:[%s201_s24 + $0x10] sm:$0xff] }
  0x10   : > { %543 = vmatprep.subr.mxu0 %v607_v2  ;;  %568 = vmatprep.subr.mxu1 %v607_v2  ;;  %v321_v14 = vld [vmem:[%s743_s2 + $0x8] sm:$0xff]  ;;  %v320_v16 = vld [vmem:[%s743_s2] sm:$0xff] }
  0x11   : > { %544 = vmatpush3.msra.mxu0 %v223_v5  ;;  %569 = vmatpush3.msra.mxu1 %v325_v6  ;;  %v215_v17 = vld [vmem:[%s201_s24] sm:$0xff]  ;;  %v216_v18 = vld [vmem:[%s201_s24 + $0x8] sm:$0xff] }
  0x12   : > { %545 = vmatprep.subr.mxu0 %v607_v2  ;;  %570 = vmatprep.subr.mxu1 %v607_v2 }
  0x13   : > { %546 = vmatpush3.msra.mxu0 %v222_v7  ;;  %571 = vmatpush3.msra.mxu1 %v324_v8 }
  0x14   : > { %547 = vmatprep.subr.mxu0 %v607_v2  ;;  %572 = vmatprep.subr.mxu1 %v607_v2 }
  0x15   : > { %548 = vmatpush3.msra.mxu0 %v221_v9  ;;  %573 = vmatpush3.msra.mxu1 %v323_v10 }
  0x16   : > { %549 = vmatprep.subr.mxu0 %v607_v2  ;;  %574 = vmatprep.subr.mxu1 %v607_v2 }
  0x17   : > { %550 = vmatpush3.msra.mxu0 %v220_v11  ;;  %575 = vmatpush3.msra.mxu1 %v322_v12 }
  0x18   : > { %551 = vmatprep.subr.mxu0 %v607_v2  ;;  %576 = vmatprep.subr.mxu1 %v607_v2 }
  0x19   : > { %552 = vmatpush3.msra.mxu0 %v219_v13  ;;  %577 = vmatpush3.msra.mxu1 %v321_v14 }
  0x1a   : > { %553 = vmatprep.subr.mxu0 %v607_v2  ;;  %578 = vmatprep.subr.mxu1 %v607_v2 }
  0x1b   : > { %554 = vmatpush3.msra.mxu0 %v218_v15  ;;  %555 = vmatprep.mubr.msk.f32.mxu0 %vm608_vm1, %v607_v2 }
  0x1c   : > { %579 = vmatpush3.msra.mxu1 %v320_v16  ;;  %580 = vmatprep.mubr.msk.f32.mxu1 %vm608_vm1, %v607_v2 }
  0x1d   : > { %556 = vmatmul.mubr.msk.f32.vlgmr.msra.gmra.mxu0 %vm226_vm0, %v215_v17  ;;  %581 = vmatmul.mubr.msk.f32.vlgmr.msra.gmra.mxu1 %vm226_vm0, %v215_v17 }
  0x1e   : > { %558 = vmatprep.mubr.msk.f32.mxu0 %vm608_vm1, %v607_v2  ;;  %583 = vmatprep.mubr.msk.f32.mxu1 %vm608_vm1, %v607_v2 }
  0x21   : > { %559 = vmatmul.mubr.msk.f32.gmra.mxu0 %vm226_vm0, %v216_v18  ;;  %584 = vmatmul.mubr.msk.f32.gmra.mxu1 %vm226_vm0, %v216_v18 }
  0x22   : > { %561 = vmatprep.mubr.msk.f32.mxu0 %vm608_vm1, %v607_v2  ;;  %586 = vmatprep.mubr.msk.f32.mxu1 %vm608_vm1, %v607_v2 }
  0x25   : > { %562 = vmatmul.mubr.msk.f32.gmra.mxu0 %vm226_vm0, %v217_v19  ;;  %587 = vmatmul.mubr.msk.f32.gmra.mxu1 %vm226_vm0, %v217_v19 }
  0xdd   : > { %v302_v20 = vpop.f32.mrf.mxu0  ;;  %v394_v21 = vpop.f32.mrf.mxu1 }
  0xde   : > { %317 = vst.msk [vmem:[%s207_s5] sm:$0xff] %vm316_vm2, %v302_v20 }
  0xdf   : > { %408 = vst.msk [vmem:[%s213_s8] sm:$0xff] %vm226_vm0, %v394_v21  ;;  %v557_v22 = vpop.f32.mrf.mxu0  ;;  %v582_v23 = vpop.f32.mrf.mxu1 }
  0xe1   : > { %v307_v24 = vpop.f32.mrf.mxu0  ;;  %v399_v25 = vpop.f32.mrf.mxu1 }
  0xe2   : > { %318 = vst.msk [vmem:[%s207_s5 + $0x8] sm:$0xff] %vm316_vm2, %v307_v24 }
  0xe3   : > { %409 = vst.msk [vmem:[%s213_s8 + $0x8] sm:$0xff] %vm226_vm0, %v399_v25  ;;  %v560_v26 = vpop.f32.mrf.mxu0  ;;  %v585_v27 = vpop.f32.mrf.mxu1 }
  0xe5   : > { %v312_v28 = vpop.f32.mrf.mxu0  ;;  %v404_v29 = vpop.f32.mrf.mxu1 }
  0xe6   : > { %319 = vst.msk [vmem:[%s207_s5 + $0x10] sm:$0xff] %vm316_vm2, %v312_v28 }
  0xe7   : > { %410 = vst.msk [vmem:[%s213_s8 + $0x10] sm:$0xff] %vm226_vm0, %v404_v29  ;;  %v563_v30 = vpop.f32.mrf.mxu0  ;;  %v588_v31 = vpop.f32.mrf.mxu1 }
  0xe8 PF: > { %s15_s15 = sadd.s32 1, %s605_s15  }
  0xe9   : > { %p12_p4 = scmp.ge.s32.totalorder %s15_s15, 4  }
  0xeb   :  { %14 = sbr.rel (!%p12_p4) target bundleno = 1 (0x1), region = 74 }

</bundles_post_ra>
